<compile_context>
chip_gen: v7x
topology: tpu7x:2x2x1
jax: 0.10.0
libtpu: 0.0.40
codegen_flags: <defaults>
</compile_context>

<pallas_src>
from functools import partial
import math

import jax
import jax.numpy as jnp
from jax.experimental import pallas as pl
from jax.experimental.pallas import tpu as pltpu


_LANE = 512                      # lane-dense last dim (multiple of 128)
_BLOCK_BYTES = 2 * 1024 * 1024   # ~2 MiB target block size (mem-bound sweet spot)


def _drop_path_kernel(keep_ref, x_ref, o_ref, *, inv_keep_prob):
    # keep_ref : SMEM int32 (B,)    -- per-sample keep flag (0 or 1)
    # x_ref    : VMEM (1, TR, L)    -- lane-dense tile of one sample
    # o_ref    : VMEM (1, TR, L)
    b = pl.program_id(0)
    scale = keep_ref[b].astype(jnp.float32) * jnp.float32(inv_keep_prob)
    o_ref[...] = x_ref[...] * scale.astype(o_ref.dtype)


def _round_up(a, m):
    return (a + m - 1) // m * m


def drop_path(x, drop_prob: float = 0.0, training: bool = False, *, key=None):
    """JAX/Pallas equivalent of the PyTorch drop_path function."""
    if drop_prob == 0.0 or not training:
        return x
    assert key is not None, "key required when training with drop_prob > 0"

    keep_prob = 1.0 - drop_prob
    orig_shape = x.shape
    B = orig_shape[0]
    N = math.prod(orig_shape[1:])

    # random_tensor = floor(keep_prob + U[0,1)) -> Bernoulli(keep_prob) in {0,1}.
    # Draw in float32 so keep_prob is not perturbed for low-precision dtypes.
    u = jax.random.uniform(key, (B,), dtype=jnp.float32)
    keep = jnp.floor(jnp.float32(keep_prob) + u).astype(jnp.int32)

    # --- lane-dense re-tiling ----------------------------------------------
    itemsize = jnp.dtype(x.dtype).itemsize
    L = _LANE
    N_pad = _round_up(N, L)
    R = N_pad // L

    tr_cap = max(8, _BLOCK_BYTES // (L * itemsize))
    tr_cap = (tr_cap // 8) * 8
    if R <= tr_cap:
        TR = R                     # full second-to-last dim -> always legal
    else:
        TR = tr_cap                # multiple of 8 sublanes
        R = _round_up(R, TR)       # pad so the grid divides evenly
        N_pad = R * L
    grid_r = R // TR

    x_flat = x.reshape(B, N)
    if N_pad != N:
        x_flat = jnp.pad(x_flat, ((0, 0), (0, N_pad - N)))
    x3 = x_flat.reshape(B, R, L)

    block_bytes = TR * L * itemsize
    # in + out blocks, double-buffered, plus headroom; safe on v5e/v6e/v7x.
    vmem_limit = int(min(64 * 1024 * 1024, max(32 * 1024 * 1024, 8 * block_bytes)))

    kernel = partial(_drop_path_kernel, inv_keep_prob=1.0 / keep_prob)

    out = pl.pallas_call(
        kernel,
        out_shape=jax.ShapeDtypeStruct((B, R, L), x.dtype),
        grid_spec=pltpu.PrefetchScalarGridSpec(
            num_scalar_prefetch=1,              # `keep` lands in SMEM
            grid=(B, grid_r),
            in_specs=[
                pl.BlockSpec((1, TR, L), lambda b, r, keep: (b, r, 0)),
            ],
            out_specs=pl.BlockSpec((1, TR, L), lambda b, r, keep: (b, r, 0)),
        ),
        compiler_params=pltpu.CompilerParams(
            dimension_semantics=("parallel", "parallel"),
            vmem_limit_bytes=vmem_limit,
        ),
    )(keep, x3)

    out = out.reshape(B, N_pad)
    if N_pad != N:
        out = out[:, :N]
    return out.reshape(orig_shape)


class DropPath:
    """Mirror of the PyTorch DropPath module (stochastic depth)."""

    def __init__(self, drop_prob=None):
        self.drop_prob = drop_prob
        self.training = True

    def __call__(self, x, *, key=None):
        return drop_path(x, self.drop_prob or 0.0, self.training, key=key)


if __name__ == "__main__":
    root = jax.random.PRNGKey(0)
    k_x, k_mask = jax.random.split(root)

    B, C, H, W = 2, 4, 16, 16
    x = jax.random.normal(k_x, (B, C, H, W), dtype=jnp.float32)

    drop_prob = 0.2
    mod = DropPath(drop_prob)
    mod.training = True

    out = jax.block_until_ready(mod(x, key=k_mask))

    # Reference (pure JAX) with the same mask, matching torch semantics:
    keep_prob = 1.0 - drop_prob
    u = jax.random.uniform(k_mask, (B,), dtype=jnp.float32)
    mask = jnp.floor(jnp.float32(keep_prob) + u).astype(x.dtype)
    ref = (x / keep_prob) * mask[:, None, None, None]
    assert jnp.allclose(out, ref, atol=1e-5, rtol=1e-5), "mismatch vs reference"

    # Eval mode / drop_prob=0 path is identity.
    mod.training = False
    out_eval = jax.block_until_ready(mod(x, key=k_mask))
    assert jnp.array_equal(out_eval, x)

    print("KERNEL_OK")
</pallas_src>

<mosaic_0001>
module attributes {stable_mosaic.version = 11 : i64} {
  func.func @_drop_path_kernel(%arg0: i32, %arg1: i32, %arg2: memref<2xi32, #tpu.memory_space<smem>>, %arg3: memref<1x2x512xf32, #tpu.memory_space<vmem>>, %arg4: memref<1x2x512xf32, #tpu.memory_space<vmem>>) attributes {dimension_semantics = [#tpu.dimension_semantics<parallel>, #tpu.dimension_semantics<parallel>], iteration_bounds = array<i64: 2, 1>, scalar_prefetch = 1 : i64, scratch_operands = 0 : i64, tpu.core_type = #tpu.core_type<tc>, window_params = [{transform_indices = @transform_0, window_bounds = array<i64: 1, 2, 512>}, {transform_indices = @transform_1, window_bounds = array<i64: 1, 2, 512>}]} {
    %0 = arith.index_cast %arg0 : i32 to index
    %1 = memref.load %arg2[%0] : memref<2xi32, #tpu.memory_space<smem>>
    %2 = arith.sitofp %1 : i32 to f32
    %cst = arith.constant 1.250000e+00 : f32
    %3 = arith.mulf %2, %cst : f32
    %c0 = arith.constant 0 : index
    %c0_0 = arith.constant 0 : index
    %c0_1 = arith.constant 0 : index
    %4 = vector.load %arg3[%c0, %c0_0, %c0_1] : memref<1x2x512xf32, #tpu.memory_space<vmem>>, vector<1x2x512xf32>
    %5 = vector.broadcast %3 : f32 to vector<1x2x512xf32>
    %6 = arith.mulf %4, %5 : vector<1x2x512xf32>
    %c0_2 = arith.constant 0 : index
    %c0_3 = arith.constant 0 : index
    %c0_4 = arith.constant 0 : index
    %7 = vector.load %arg4[%c0_2, %c0_3, %c0_4] : memref<1x2x512xf32, #tpu.memory_space<vmem>>, vector<1x2x512xf32>
    tpu.vector_store %arg4[%c0_2, %c0_3, %c0_4], %6 {strides = array<i32>} : memref<1x2x512xf32, #tpu.memory_space<vmem>>, vector<1x2x512xf32>,
    return
  }
  func.func @transform_0(%arg0: i32, %arg1: i32, %arg2: memref<2xi32, #tpu.memory_space<smem>>) -> (i32, i32, i32) {
    %c0_i32 = arith.constant 0 : i32
    %c0_i32_0 = arith.constant 0 : i32
    return %arg0, %arg1, %c0_i32 : i32, i32, i32
  }
  func.func @transform_1(%arg0: i32, %arg1: i32, %arg2: memref<2xi32, #tpu.memory_space<smem>>) -> (i32, i32, i32) {
    %c0_i32 = arith.constant 0 : i32
    %c0_i32_0 = arith.constant 0 : i32
    return %arg0, %arg1, %c0_i32 : i32, i32, i32
  }
}

</mosaic_0001>

<bundles_post_ra>
// kernel: tpu_custom_call.1
= control target key start
LH: loop header
LB: loop body
LE: loop exit
PB: predicated region body
PF: predicated region fallthrough
CT: control target
= control target key end

     0   :  { %s673_s0 = inlined_call_operand.hbm [shape: s32[2], index: 0, kind: input, shape index: {}]   ;;  %s674_s1 = inlined_call_operand.hbm [shape: f32[2,2,512], index: 1, kind: input, shape index: {}]   ;;  %s675_s2 = inlined_call_operand.hbm [shape: f32[2,2,512], index: 2, kind: output, shape index: {}]  }
   0x1   :  { %s344_s11 = scalar_lea.hbm %s673_s0, 16 }
   0x2   :  { %p345_p0 = scmp.ne.s32.totalorder %s673_s0, %s344_s11  ;;  %p348_p1 = scmp.lt.u32.totalorder %s344_s11, %s673_s0 }
   0x4   :  { %p350_p2 = pnand %p348_p1, %p345_p0 }
   0x6   :  { %353 = shalt.err (!%p350_p2)  }
   0x7   :  { %s470_s16 = smov [#allocation3]  }
   0x8   :  { %8 = dma.hbm_to_smem %s673_s0, 16, %s470_s16, [#allocation2] }
   0x9   :  { %436 = dma.done.wait [#allocation2], 16 }
   0xa   :  { %437 = vsyncadd [#allocation2], 4294967280 }
   0xb   :  { %10 = sfence }
   0xc   :  { %11 = vsyncpa [#allocation5], 0 }
   0xd   :  { %13 = vsyncpa [#allocation5 + $0x1], 0 }
   0xe   :  { %14 = vsyncpa [#allocation6], 0 }
   0xf   :  { %16 = vsyncpa [#allocation6 + $0x1], 0  ;;  %s500_s19 = smov 0   ;;  %s502_s20 = smov 0  }
  0x10   :  { %s504_s21 = smov 0   ;;  %s506_s22 = smov 0  }
  0x11   :  { %s508_s23 = smov 0   ;;  %s510_s24 = smov 0  }
  0x12 LB: > { %s264_s0 = sadd.s32 4294967295, %s468_s24   ;;  %s265_s25 = sadd.s32 4294967294, %s468_s24   ;;  %s468_s24 = sphi %s510_s24, %s22_s24   ;;  %s464_s23 = sphi %s508_s23, %s691_s23   ;;  %s460_s22 = sphi %s506_s22, %s690_s22   ;;  %s456_s21 = sphi %s504_s21, %s689_s21   ;;  %s452_s20 = sphi %s502_s20, %s688_s20   ;;  %s448_s19 = sphi %s500_s19, %s687_s19  }
  0x13   : > { %s34_s26 = sadd.s32 1, %s464_s23  ;;  %s43_s27 = sadd.s32 1, %s456_s21 }
  0x14   : > { %p36_p3 = scmp.ge.s32.totalorder %s34_s26, 2  ;;  %p50_p4 = scmp.ne.s32.totalorder %s456_s21, %s452_s20 }
  0x15   : > { %p51_p5 = scmp.eq.s32.totalorder %s468_s24, 0  ;;  %p56_p6 = scmp.ne.s32.totalorder %s452_s20, %s448_s19 }
  0x16   : > { %s693_s26 = smov (%p36_p3, %s34_s26), 0  ;;  %p57_p8 = scmp.eq.s32.totalorder %s264_s0, 0 }
  0x17   : > { %p541_p7 = por %p51_p5, %p50_p4  ;;  %s38_s29 = ssub.s32 %s464_s23, %s693_s26 }
  0x18   : > { %p82_p9 = scmp.eq.s32.totalorder %s264_s0, 1  ;;  %p41_p10 = scmp.eq.s32.totalorder %s38_s29, 0 }
  0x19   : > { %p547_p11 = por %p57_p8, %p56_p6  ;;  %p88_p13 = scmp.eq.s32.totalorder %s265_s25, 1 }
  0x1a   : > { %p551_p12 = por %p82_p9, %p50_p4  ;;  %p293_p2 = scmp.lt.s32.totalorder %s468_s24, 2 }
  0x1b   : > { %s556_s4 = scalar_select %p41_p10, %s456_s21, %s43_s27  }
  0x1c   : > { %s679_s3 = scalar_select %p551_p12, 1, 0 }
  0x1d   : > { %p558_p0 = por %p88_p13, %p56_p6  ;;  %s108_s6 = sand.u32 1, %s456_s21  }
  0x1e   : > { %s268_s7 = sshll.u32 %s108_s6, 3  ;;  %s279_s8 = sshll.u32 %s464_s23, 7 }
  0x1f   : > { %s680_s5 = scalar_select %p558_p0, 1, 0 }
  0x20   : > { %s569_s11 = scalar_lea.hbm %s674_s1, %s279_s8  ;;  %s112_s12 = scalar_lea.vmem [#allocation4], %s268_s7 }
  0x21   : > { %s122_s13 = sshll.u32 %s112_s12, 4  ;;  %p575_p3 = pnand %p293_p2, %p541_p7  ;;  %s571_s13 = int_to_ptr.vmem [resolvable:$true] %s122_s13 }
  0x22   : > { %s109_s15 = scalar_lea.sflag [#allocation5], %s108_s6  ;;  %s354_s16 = scalar_lea.hbm %s569_s11, 128 }
  0x23   : > { %p355_p6 = scmp.ne.s32.totalorder %s569_s11, %s354_s16  ;;  %p356_p8 = pneg %p575_p3 }
  0x24   : > { %s359_s0 = scalar_lea.hbm %s674_s1, 256  ;;  %p360_p7 = scmp.lt.u32.totalorder %s569_s11, %s674_s1 }
  0x25   : > { %p357_p9 = pnand %p356_p8, %p355_p6  ;;  %p361_p13 = scmp.lt.u32.totalorder %s359_s0, %s354_s16 }
  0x26   : > { %p363_p1 = scmp.lt.u32.totalorder %s354_s16, %s569_s11 }
  0x27   : > { %p358_p10 = pneg %p357_p9  ;;  %p362_p2 = por %p361_p13, %p360_p7 }
  0x29   : > { %p364_p4 = por %p363_p1, %p362_p2 }
  0x2b   : > { %p365_p5 = pnand %p364_p4, %p358_p10 }
  0x2d   : > { %368 = shalt.err (!%p365_p5)
}
  0x2e   : > { %s369_s28 = scalar_lea.vmem %s571_s13, 128  ;;  %s471_s29 = smov [#allocation4]  }
  0x2f   : > { %p370_p6 = scmp.ne.s32.totalorder %s571_s13, %s369_s28  ;;  %s374_s6 = sshll.u32 %s471_s29, 4  ;;  %s375_s6 = int_to_ptr.vmem [resolvable:$false] %s374_s6 }
  0x30   : > { %s376_s7 = scalar_lea.vmem %s375_s6, 256  ;;  %p377_p12 = scmp.lt.s32.totalorder %s571_s13, %s375_s6 }
  0x31   : > { %p372_p9 = pnand %p370_p6, %p356_p8  ;;  %p378_p7 = scmp.lt.s32.totalorder %s376_s7, %s369_s28 }
  0x33   : > { %p373_p0 = pneg %p372_p9  ;;  %p379_p13 = por %p378_p7, %p377_p12 }
  0x35   : > { %p380_p1 = pnand %p379_p13, %p373_p0 }
  0x37   : > { %383 = shalt.err (!%p380_p1)
}
  0x38   : > { %288 = dma.hbm_to_vmem [thread:$0]  (!%p575_p3), %s569_s11, 128, %s571_s13, %s109_s15  }
  0x39   : > { %p682_p4 = scmp.lt.s32.totalorder %s468_s24, 3  ;;  %p683_p5 = scmp.ge.s32.totalorder %s468_s24, 1 }
  0x3b   : > { %p128_p8 = pnand %p683_p5, %p682_p4 }
  0x3c   : > { %s611_s8 = sand.u32 (!%p128_p8), 1, %s452_s20  }
  0x3d   : > { %131 = sbr.rel (%p128_p8) target bundleno = 97 (0x61), region = 24  ;;  %s272_s9 = sshll.u32 (!%p128_p8), %s611_s8, 3 }
  0x3e   : > { %s134_s10 = scalar_lea.sflag (!%p128_p8), [#allocation5], %s611_s8  ;;  %s137_s12 = scalar_lea.vmem (!%p128_p8), [#allocation4], %s272_s9 }
  0x44   : > { %439 = dma.done.wait (%p547_p11), %s134_s10, 128  }
  0x45   : > { %441 = vsyncadd (%p547_p11), %s134_s10, 4294967168  ;;  %s156_s11 = sld [smem:[#allocation3 + %s460_s22]]  ;;  %s155_s14 = scalar_lea.vmem [#allocation7], %s272_s9  ;;  %v159_v0 = vld [vmem:[%s137_s12] sm:$0xff] }
  0x46   : > { %s180_s15 = sshll.u32 %s155_s14, 4  ;;  %s280_s17 = sshll.u32 %s460_s22, 7  ;;  %s621_s15 = int_to_ptr.vmem [resolvable:$true] %s180_s15 }
  0x47   : > { %s626_s30 = scalar_lea.hbm %s675_s2, %s280_s17  ;;  %s164_s25 = scalar_lea.sflag [#allocation6], %s611_s8 }
  0x48   : > { %s384_s27 = scalar_lea.vmem %s621_s15, 128  ;;  %p684_p12 = scmp.ne.s32.totalorder %s679_s3, 0 }
  0x49   : > { %p385_p11 = scmp.ne.s32.totalorder %s621_s15, %s384_s27  ;;  %s472_s22 = smov [#allocation7]  }
  0x4a   : > { %s388_s28 = sshll.u32 %s472_s22, 4  ;;  %s389_s28 = int_to_ptr.vmem [resolvable:$false] %s388_s28 }
  0x4b   : > { %s157_s13 = scvt.s32.f32 %s156_s11  ;;  %p386_p0 = pnand %p385_p11, %p684_p12 }
  0x4c   : > { %s390_s29 = scalar_lea.vmem %s389_s28, 256  ;;  %p391_p10 = scmp.lt.s32.totalorder %s621_s15, %s389_s28 }
  0x4d   : > { %s158_s16 = smul.f32 1.25, %s157_s13  ;;  %p387_p3 = pneg %p386_p0 }
  0x4e   : > { %p392_p2 = scmp.lt.s32.totalorder %s390_s29, %s384_s27 }
  0x4f   : > { %v160_v1 = vstv %s158_s16 }
  0x50   : > { %v161_v2 = vmul.f32 %v160_v1, %v159_v0  ;;  %p393_p6 = por %p392_p2, %p391_p10 }
  0x52   : > { %162 = vst [vmem:[%s155_s14] sm:$0xff] %v161_v2  ;;  %p394_p9 = pnand %p393_p6, %p387_p3 }
  0x54   : > { %397 = shalt.err (!%p394_p9)
}
  0x55   : > { %s398_s6 = scalar_lea.hbm %s626_s30, 128  ;;  %s402_s9 = scalar_lea.hbm %s675_s2, 256 }
  0x56   : > { %p399_p7 = scmp.ne.s32.totalorder %s626_s30, %s398_s6  ;;  %p403_p4 = scmp.lt.u32.totalorder %s626_s30, %s675_s2 }
  0x57   : > { %p404_p5 = scmp.lt.u32.totalorder %s402_s9, %s398_s6  ;;  %p406_p11 = scmp.lt.u32.totalorder %s398_s6, %s626_s30 }
  0x58   : > { %p400_p13 = pnand %p399_p7, %p684_p12 }
  0x59   : > { %p405_p8 = por %p404_p5, %p403_p4 }
  0x5a   : > { %p401_p1 = pneg %p400_p13 }
  0x5b   : > { %p407_p0 = por %p406_p11, %p405_p8 }
  0x5d   : > { %p408_p3 = pnand %p407_p0, %p401_p1 }
  0x5f   : > { %411 = shalt.err (!%p408_p3)
}
  0x60   : > { %283 = dma.vmem_to_hbm [thread:$0]  (%p684_p12), %s621_s15, 128, %s626_s30, %s164_s25  }
  0x61 PF: > { %s192_s11 = sand.u32 1, %s448_s19   ;;  %p685_p10 = scmp.ne.s32.totalorder %s680_s5, 0 }
  0x62   : > { %p686_p2 = scmp.ge.s32.totalorder %s468_s24, 2  ;;  %s193_s13 = scalar_lea.sflag [#allocation6], %s192_s11 }
  0x64   : > { %p290_p6 = pnand %p686_p2, %p685_p10 }
  0x66   : > { %443 = dma.done.wait (!%p290_p6), %s193_s13, 128  }
  0x67   : > { %445 = vsyncadd (!%p290_p6), %s193_s13, 4294967168  ;;  %s22_s24 = sadd.s32 1, %s468_s24   ;;  %s687_s19 = smov %s452_s20 }
  0x68   : > { %p19_p9 = scmp.ge.s32.totalorder %s22_s24, 4   ;;  %s688_s20 = smov %s456_s21 }
  0x69   : > { %s689_s21 = smov %s556_s4  ;;  %s690_s22 = smov %s464_s23 }
  0x6a   : > { %s691_s23 = smov %s693_s26  ;;  %21 = sbr.rel (!%p19_p9) target bundleno = 18 (0x12), region = 69 }
  0x71   :  { %198 = vsyncpa [#allocation5], 1 }
  0x72   :  { %200 = vsyncpa [#allocation5 + $0x1], 1 }
  0x73   :  { %201 = vsyncpa [#allocation6], 1 }
  0x74   :  { %203 = vsyncpa [#allocation6 + $0x1], 1 }

</bundles_post_ra>
